<compile_context>
chip_gen: v7x
topology: tpu7x:2x2x1
jax: 0.10.0
libtpu: 0.0.40
codegen_flags: <defaults>
</compile_context>

<pallas_src>
import functools

import jax
import jax.numpy as jnp
from jax.experimental import pallas as pl
from jax.experimental.pallas import tpu as pltpu


def _round_up(x, m):
    return ((x + m - 1) // m) * m


# ---------------------------------------------------------------------------
# Fused kernel: one grid step processes B images entirely in VMEM/vregs:
#   conv3x3 + masked ReLU -> conv3x3 + masked ReLU -> global avg pool -> fc.
# ---------------------------------------------------------------------------
def _fused_forward_kernel(x_ref, m_ref, w1_ref, a1_ref, w2_ref, a2_ref,
                          wfc_ref, b_ref, out_ref, *, H, W, B):
    HW = H * W
    BHW = B * HW

    def conv3x3(x, w_ref):
        # x: (Cin, BHW).  Build the masked 9-tap window stack once (each tap is
        # a static lane rotation on the XLU; any circular / cross-image read
        # lands only on masked-invalid positions), then one MXU dot with the
        # taps folded into K:  (Cout, 9*Cin) @ (9*Cin, BHW) -> (Cout, BHW).
        wins = []
        t = 0
        for a in (-1, 0, 1):          # row offset  (kh = a + 1)
            for b in (-1, 0, 1):      # col offset  (kw = b + 1)
                s = a * W + b
                win = x if s == 0 else pltpu.roll(x, (-s) % BHW, axis=1)
                if (a, b) != (0, 0):
                    win = win * m_ref[t:t + 1, :]   # zero invalid-tap positions
                wins.append(win)
                t += 1
        window = jnp.concatenate(wins, axis=0)               # (9*Cin, BHW)
        return jnp.dot(w_ref[...], window,
                       preferred_element_type=jnp.float32)   # (Cout, BHW)

    def masked_relu(y, alpha):
        # ReLU_masked / STE gate: m = (alpha_aux > 0); out = m*relu(y)+(1-m)*y,
        # i.e. zero only where the gate is on AND the value is negative.
        return jnp.where((alpha > 0.0) & (y < 0.0), 0.0, y)

    h1 = masked_relu(conv3x3(x_ref[...], w1_ref), a1_ref[...])    # (C1, BHW)
    h2 = masked_relu(conv3x3(h1, w2_ref), a2_ref[...])            # (C2, BHW)

    # Global average pool per image (lane slices at 128-aligned offsets) + fc,
    # fused as the epilogue:  (NC, C2) @ (C2, B) + (NC, 1)  ->  (NC, B).
    cols = [jnp.sum(h2[:, i * HW:(i + 1) * HW], axis=1, keepdims=True)
            for i in range(B)]
    pooled = (cols[0] if B == 1 else jnp.concatenate(cols, axis=1)) * (1.0 / HW)
    out_ref[0] = (jnp.dot(wfc_ref[...], pooled,
                          preferred_element_type=jnp.float32) + b_ref[...])


# ---------------------------------------------------------------------------
# Wrapper: one pallas_call for the whole forward.
# ---------------------------------------------------------------------------
def model_relu_rp_forward(x_nchw, params, images_per_step=None):
    N, Cin, H, W = x_nchw.shape
    HW = H * W
    C1 = params["w1"].shape[0]
    C2 = params["w2"].shape[0]
    NC = params["w_fc"].shape[0]

    if images_per_step is None:
        # >=2 grid steps keeps both v7x TensorCores busy ("parallel"); batching
        # several images per step amortizes the ~600-cycle per-step pipeline
        # overhead on single-TC v5e/v6e.
        images_per_step = N // 2 if (N >= 2 and N % 2 == 0) else N
    B = images_per_step
    assert N % B == 0
    steps = N // B
    BHW = B * HW

    # Pad input channels to the sublane tile so the in-kernel 9-tap stack stays
    # tile-aligned (padded channels and matching weight columns are zero).
    Cin_p = _round_up(Cin, 8)

    # NCHW -> lane-dense (Cin_pad, N*HW): channels on sublanes, pixels on lanes.
    x = x_nchw.astype(jnp.float32).reshape(N, Cin, HW)
    x = jnp.transpose(x, (1, 0, 2)).reshape(Cin, N * HW)
    x = jnp.pad(x, ((0, Cin_p - Cin), (0, 0)))

    # Per-tap validity masks (zero where the tap's source pixel falls outside
    # its own image), tiled across the B images of one grid step.
    ii = jnp.arange(HW, dtype=jnp.int32) // W
    jj = jnp.arange(HW, dtype=jnp.int32) % W
    rows = []
    for a in (-1, 0, 1):
        for b in (-1, 0, 1):
            ok = (ii + a >= 0) & (ii + a < H) & (jj + b >= 0) & (jj + b < W)
            rows.append(ok.astype(jnp.float32))
    masks = jnp.tile(jnp.stack(rows), (1, B))                      # (9, BHW)

    # Conv weights: torch (Cout, Cin, 3, 3) -> (Cout, 9*Cin_pad), column index
    # = (kh*3 + kw)*Cin_pad + cin  (matches the window-stack row order).
    def fold_w(w, cin_pad):
        co, ci = w.shape[0], w.shape[1]
        w = jnp.pad(w.astype(jnp.float32),
                    ((0, 0), (0, cin_pad - ci), (0, 0), (0, 0)))
        return jnp.transpose(w, (0, 2, 3, 1)).reshape(co, 9 * cin_pad)

    w1 = fold_w(params["w1"], Cin_p)              # (C1, 9*Cin_p)
    w2 = fold_w(params["w2"], C1)                 # (C2, 9*C1)

    # ReLU_masked alpha_aux: torch (C, H, W), broadcast over batch -> (C, BHW).
    a1 = jnp.tile(params["alpha1"].reshape(C1, HW).astype(jnp.float32), (1, B))
    a2 = jnp.tile(params["alpha2"].reshape(C2, HW).astype(jnp.float32), (1, B))

    wfc = params["w_fc"].astype(jnp.float32)              # (NC, C2)
    bfc = params["b_fc"].astype(jnp.float32).reshape(NC, 1)

    kernel = functools.partial(_fused_forward_kernel, H=H, W=W, B=B)
    # NOTE: the grid-invariant operands (masks/weights/alphas) could be marked
    # pipeline_mode=pl.Buffered(1) to halve their VMEM copies; negligible at
    # these shapes so omitted for lowering robustness.
    out = pl.pallas_call(
        kernel,
        out_shape=jax.ShapeDtypeStruct((steps, NC, B), jnp.float32),
        grid_spec=pltpu.PrefetchScalarGridSpec(
            num_scalar_prefetch=0,
            grid=(steps,),
            in_specs=[
                pl.BlockSpec((Cin_p, BHW), lambda s: (0, s)),      # x block
                pl.BlockSpec((9, BHW), lambda s: (0, 0)),          # tap masks
                pl.BlockSpec((C1, 9 * Cin_p), lambda s: (0, 0)),   # w1 (folded K)
                pl.BlockSpec((C1, BHW), lambda s: (0, 0)),         # alpha1
                pl.BlockSpec((C2, 9 * C1), lambda s: (0, 0)),      # w2 (folded K)
                pl.BlockSpec((C2, BHW), lambda s: (0, 0)),         # alpha2
                pl.BlockSpec((NC, C2), lambda s: (0, 0)),          # fc weight
                pl.BlockSpec((NC, 1), lambda s: (0, 0)),           # fc bias
            ],
            out_specs=pl.BlockSpec((1, NC, B), lambda s: (s, 0, 0)),
        ),
        compiler_params=pltpu.CompilerParams(
            dimension_semantics=("parallel",)),
    )(x, masks, w1, a1, w2, a2, wfc, bfc)

    # (steps, NC, B) -> (N, NC)
    return jnp.transpose(out, (0, 2, 1)).reshape(N, NC)


# ---------------------------------------------------------------------------
# Pure-JAX reference (torch-layout weights) for a correctness check.
# ---------------------------------------------------------------------------
def _reference_forward(x_nchw, params):
    x = x_nchw.astype(jnp.float32)

    def conv3x3(inp, w):      # NCHW input, OIHW weight, padding=1, stride=1
        return jax.lax.conv_general_dilated(
            inp, w.astype(jnp.float32), window_strides=(1, 1),
            padding=((1, 1), (1, 1)),
            dimension_numbers=("NCHW", "OIHW", "NCHW"),
            precision=jax.lax.Precision.HIGHEST)

    def gate(y, alpha):       # alpha: (C, H, W), broadcast over batch
        a = alpha[None].astype(jnp.float32)
        return jnp.where((a > 0.0) & (y < 0.0), 0.0, y)

    h1 = gate(conv3x3(x, params["w1"]), params["alpha1"])
    h2 = gate(conv3x3(h1, params["w2"]), params["alpha2"])
    pooled = jnp.mean(h2, axis=(2, 3))                            # (N, C2)
    return (jnp.dot(pooled, params["w_fc"].astype(jnp.float32).T,
                    precision=jax.lax.Precision.HIGHEST)
            + params["b_fc"].astype(jnp.float32))


def init_params(key, cin=3, c1=16, c2=16, h=16, w=16, num_classes=10):
    ks = jax.random.split(key, 6)
    # Conv weights in the torch OIHW layout; kaiming-normal-ish.
    w1 = jax.random.normal(ks[0], (c1, cin, 3, 3), jnp.float32) * jnp.sqrt(
        2.0 / (9 * cin))
    w2 = jax.random.normal(ks[1], (c2, c1, 3, 3), jnp.float32) * jnp.sqrt(
        2.0 / (9 * c1))
    # fc in the torch Linear layout (out_features, in_features).
    w_fc = jax.random.normal(ks[2], (num_classes, c2), jnp.float32) * jnp.sqrt(
        1.0 / c2)
    b_fc = jax.random.normal(ks[3], (num_classes,), jnp.float32) * 0.1
    # ReLU_masked alpha_aux gate params (torch (C, H, W), broadcast over batch).
    alpha1 = jax.random.normal(ks[4], (c1, h, w), jnp.float32)
    alpha2 = jax.random.normal(ks[5], (c2, h, w), jnp.float32)
    return dict(w1=w1, w2=w2, w_fc=w_fc, b_fc=b_fc,
                alpha1=alpha1, alpha2=alpha2)


if __name__ == "__main__":
    key = jax.random.PRNGKey(0)
    pkey, xkey = jax.random.split(key)
    params = init_params(pkey, cin=3, c1=16, c2=16, h=16, w=16, num_classes=10)
    # NCHW input, as the PyTorch module expects (batch=2, C=3, 16x16)
    x = jax.random.normal(xkey, (2, 3, 16, 16), jnp.float32)

    fwd = jax.jit(lambda xx: model_relu_rp_forward(xx, params))
    out = fwd(x)
    jax.block_until_ready(out)
    assert out.shape == (2, 10) and out.dtype == jnp.float32
    assert bool(jnp.all(jnp.isfinite(out)))

    ref = _reference_forward(x, params)
    max_err = float(jnp.max(jnp.abs(out - ref)))
    assert max_err < 3e-2, f"mismatch vs reference: max|diff| = {max_err}"

    print("KERNEL_OK")
</pallas_src>

<mosaic_0001>
module attributes {stable_mosaic.version = 11 : i64} {
  func.func @_fused_forward_kernel(%arg0: i32, %arg1: memref<8x256xf32, #tpu.memory_space<vmem>>, %arg2: memref<9x256xf32, #tpu.memory_space<vmem>>, %arg3: memref<16x72xf32, #tpu.memory_space<vmem>>, %arg4: memref<16x256xf32, #tpu.memory_space<vmem>>, %arg5: memref<16x144xf32, #tpu.memory_space<vmem>>, %arg6: memref<16x256xf32, #tpu.memory_space<vmem>>, %arg7: memref<10x16xf32, #tpu.memory_space<vmem>>, %arg8: memref<10x1xf32, #tpu.memory_space<vmem>>, %arg9: memref<1x10x1xf32, #tpu.memory_space<vmem>>) attributes {dimension_semantics = [#tpu.dimension_semantics<parallel>], iteration_bounds = array<i64: 2>, scalar_prefetch = 0 : i64, scratch_operands = 0 : i64, tpu.core_type = #tpu.core_type<tc>, window_params = [{transform_indices = @transform_0, window_bounds = array<i64: 8, 256>}, {pipeline_mode = #tpu.pipeline_mode<synchronous>, transform_indices = @transform_1, window_bounds = array<i64: 9, 256>}, {pipeline_mode = #tpu.pipeline_mode<synchronous>, transform_indices = @transform_2, window_bounds = array<i64: 16, 72>}, {pipeline_mode = #tpu.pipeline_mode<synchronous>, transform_indices = @transform_3, window_bounds = array<i64: 16, 256>}, {pipeline_mode = #tpu.pipeline_mode<synchronous>, transform_indices = @transform_4, window_bounds = array<i64: 16, 144>}, {pipeline_mode = #tpu.pipeline_mode<synchronous>, transform_indices = @transform_5, window_bounds = array<i64: 16, 256>}, {pipeline_mode = #tpu.pipeline_mode<synchronous>, transform_indices = @transform_6, window_bounds = array<i64: 10, 16>}, {pipeline_mode = #tpu.pipeline_mode<synchronous>, transform_indices = @transform_7, window_bounds = array<i64: 10, 1>}, {transform_indices = @transform_8, window_bounds = array<i64: 1, 10, 1>}]} {
    %c0 = arith.constant 0 : index
    %c0_0 = arith.constant 0 : index
    %0 = vector.load %arg1[%c0, %c0_0] : memref<8x256xf32, #tpu.memory_space<vmem>>, vector<8x256xf32>
    %c17_i32 = arith.constant 17 : i32
    %1 = tpu.dynamic_rotate %0 by %c17_i32 dim 1 : vector<8x256xf32>, i32 -> vector<8x256xf32>
    %c0_1 = arith.constant 0 : index
    %c0_2 = arith.constant 0 : index
    %2 = vector.load %arg2[%c0_1, %c0_2] : memref<9x256xf32, #tpu.memory_space<vmem>>, vector<1x256xf32>
    %3 = vector.broadcast %2 : vector<1x256xf32> to vector<8x256xf32>
    %4 = arith.mulf %1, %3 : vector<8x256xf32>
    %c16_i32 = arith.constant 16 : i32
    %5 = tpu.dynamic_rotate %0 by %c16_i32 dim 1 : vector<8x256xf32>, i32 -> vector<8x256xf32>
    %c1 = arith.constant 1 : index
    %c0_3 = arith.constant 0 : index
    %6 = vector.load %arg2[%c1, %c0_3] : memref<9x256xf32, #tpu.memory_space<vmem>>, vector<1x256xf32>
    %7 = vector.broadcast %6 : vector<1x256xf32> to vector<8x256xf32>
    %8 = arith.mulf %5, %7 : vector<8x256xf32>
    %c15_i32 = arith.constant 15 : i32
    %9 = tpu.dynamic_rotate %0 by %c15_i32 dim 1 : vector<8x256xf32>, i32 -> vector<8x256xf32>
    %c2 = arith.constant 2 : index
    %c0_4 = arith.constant 0 : index
    %10 = vector.load %arg2[%c2, %c0_4] : memref<9x256xf32, #tpu.memory_space<vmem>>, vector<1x256xf32>
    %11 = vector.broadcast %10 : vector<1x256xf32> to vector<8x256xf32>
    %12 = arith.mulf %9, %11 : vector<8x256xf32>
    %c1_i32 = arith.constant 1 : i32
    %13 = tpu.dynamic_rotate %0 by %c1_i32 dim 1 : vector<8x256xf32>, i32 -> vector<8x256xf32>
    %c3 = arith.constant 3 : index
    %c0_5 = arith.constant 0 : index
    %14 = vector.load %arg2[%c3, %c0_5] : memref<9x256xf32, #tpu.memory_space<vmem>>, vector<1x256xf32>
    %15 = vector.broadcast %14 : vector<1x256xf32> to vector<8x256xf32>
    %16 = arith.mulf %13, %15 : vector<8x256xf32>
    %c255_i32 = arith.constant 255 : i32
    %17 = tpu.dynamic_rotate %0 by %c255_i32 dim 1 : vector<8x256xf32>, i32 -> vector<8x256xf32>
    %c5 = arith.constant 5 : index
    %c0_6 = arith.constant 0 : index
    %18 = vector.load %arg2[%c5, %c0_6] : memref<9x256xf32, #tpu.memory_space<vmem>>, vector<1x256xf32>
    %19 = vector.broadcast %18 : vector<1x256xf32> to vector<8x256xf32>
    %20 = arith.mulf %17, %19 : vector<8x256xf32>
    %c241_i32 = arith.constant 241 : i32
    %21 = tpu.dynamic_rotate %0 by %c241_i32 dim 1 : vector<8x256xf32>, i32 -> vector<8x256xf32>
    %c6 = arith.constant 6 : index
    %c0_7 = arith.constant 0 : index
    %22 = vector.load %arg2[%c6, %c0_7] : memref<9x256xf32, #tpu.memory_space<vmem>>, vector<1x256xf32>
    %23 = vector.broadcast %22 : vector<1x256xf32> to vector<8x256xf32>
    %24 = arith.mulf %21, %23 : vector<8x256xf32>
    %c240_i32 = arith.constant 240 : i32
    %25 = tpu.dynamic_rotate %0 by %c240_i32 dim 1 : vector<8x256xf32>, i32 -> vector<8x256xf32>
    %c7 = arith.constant 7 : index
    %c0_8 = arith.constant 0 : index
    %26 = vector.load %arg2[%c7, %c0_8] : memref<9x256xf32, #tpu.memory_space<vmem>>, vector<1x256xf32>
    %27 = vector.broadcast %26 : vector<1x256xf32> to vector<8x256xf32>
    %28 = arith.mulf %25, %27 : vector<8x256xf32>
    %c239_i32 = arith.constant 239 : i32
    %29 = tpu.dynamic_rotate %0 by %c239_i32 dim 1 : vector<8x256xf32>, i32 -> vector<8x256xf32>
    %c8 = arith.constant 8 : index
    %c0_9 = arith.constant 0 : index
    %30 = vector.load %arg2[%c8, %c0_9] : memref<9x256xf32, #tpu.memory_space<vmem>>, vector<1x256xf32>
    %31 = vector.broadcast %30 : vector<1x256xf32> to vector<8x256xf32>
    %32 = arith.mulf %29, %31 : vector<8x256xf32>
    %33 = tpu.concatenate %4, %8, %12, %16, %0, %20, %24, %28, %32 in 0 : vector<8x256xf32>, vector<8x256xf32>, vector<8x256xf32>, vector<8x256xf32>, vector<8x256xf32>, vector<8x256xf32>, vector<8x256xf32>, vector<8x256xf32>, vector<8x256xf32> -> vector<72x256xf32>
    %c0_10 = arith.constant 0 : index
    %c0_11 = arith.constant 0 : index
    %34 = vector.load %arg3[%c0_10, %c0_11] : memref<16x72xf32, #tpu.memory_space<vmem>>, vector<16x72xf32>
    %cst = arith.constant dense<0.000000e+00> : vector<16x256xf32>
    %35 = tpu.matmul %34, %33, %cst {dimension_numbers = #tpu.dot_dimension_numbers<[1], [0], [0], [1], [0, 0, 1, 1], [], []>} : vector<16x72xf32>, vector<72x256xf32>, vector<16x256xf32> -> vector<16x256xf32>
    %c0_12 = arith.constant 0 : index
    %c0_13 = arith.constant 0 : index
    %36 = vector.load %arg4[%c0_12, %c0_13] : memref<16x256xf32, #tpu.memory_space<vmem>>, vector<16x256xf32>
    %cst_14 = arith.constant 0.000000e+00 : f32
    %37 = vector.broadcast %cst_14 : f32 to vector<16x256xf32>
    %38 = arith.cmpf ogt, %36, %37 : vector<16x256xf32>
    %cst_15 = arith.constant 0.000000e+00 : f32
    %39 = vector.broadcast %cst_15 : f32 to vector<16x256xf32>
    %40 = arith.cmpf olt, %35, %39 : vector<16x256xf32>
    %41 = arith.andi %38, %40 : vector<16x256xi1>
    %cst_16 = arith.constant 0.000000e+00 : f32
    %42 = vector.broadcast %cst_16 : f32 to vector<16x256xf32>
    %43 = arith.select %41, %42, %35 : vector<16x256xi1>, vector<16x256xf32>
    %c17_i32_17 = arith.constant 17 : i32
    %44 = tpu.dynamic_rotate %43 by %c17_i32_17 dim 1 : vector<16x256xf32>, i32 -> vector<16x256xf32>
    %c0_18 = arith.constant 0 : index
    %c0_19 = arith.constant 0 : index
    %45 = vector.load %arg2[%c0_18, %c0_19] : memref<9x256xf32, #tpu.memory_space<vmem>>, vector<1x256xf32>
    %46 = vector.broadcast %45 : vector<1x256xf32> to vector<16x256xf32>
    %47 = arith.mulf %44, %46 : vector<16x256xf32>
    %c16_i32_20 = arith.constant 16 : i32
    %48 = tpu.dynamic_rotate %43 by %c16_i32_20 dim 1 : vector<16x256xf32>, i32 -> vector<16x256xf32>
    %c1_21 = arith.constant 1 : index
    %c0_22 = arith.constant 0 : index
    %49 = vector.load %arg2[%c1_21, %c0_22] : memref<9x256xf32, #tpu.memory_space<vmem>>, vector<1x256xf32>
    %50 = vector.broadcast %49 : vector<1x256xf32> to vector<16x256xf32>
    %51 = arith.mulf %48, %50 : vector<16x256xf32>
    %c15_i32_23 = arith.constant 15 : i32
    %52 = tpu.dynamic_rotate %43 by %c15_i32_23 dim 1 : vector<16x256xf32>, i32 -> vector<16x256xf32>
    %c2_24 = arith.constant 2 : index
    %c0_25 = arith.constant 0 : index
    %53 = vector.load %arg2[%c2_24, %c0_25] : memref<9x256xf32, #tpu.memory_space<vmem>>, vector<1x256xf32>
    %54 = vector.broadcast %53 : vector<1x256xf32> to vector<16x256xf32>
    %55 = arith.mulf %52, %54 : vector<16x256xf32>
    %c1_i32_26 = arith.constant 1 : i32
    %56 = tpu.dynamic_rotate %43 by %c1_i32_26 dim 1 : vector<16x256xf32>, i32 -> vector<16x256xf32>
    %c3_27 = arith.constant 3 : index
    %c0_28 = arith.constant 0 : index
    %57 = vector.load %arg2[%c3_27, %c0_28] : memref<9x256xf32, #tpu.memory_space<vmem>>, vector<1x256xf32>
    %58 = vector.broadcast %57 : vector<1x256xf32> to vector<16x256xf32>
    %59 = arith.mulf %56, %58 : vector<16x256xf32>
    %c255_i32_29 = arith.constant 255 : i32
    %60 = tpu.dynamic_rotate %43 by %c255_i32_29 dim 1 : vector<16x256xf32>, i32 -> vector<16x256xf32>
    %c5_30 = arith.constant 5 : index
    %c0_31 = arith.constant 0 : index
    %61 = vector.load %arg2[%c5_30, %c0_31] : memref<9x256xf32, #tpu.memory_space<vmem>>, vector<1x256xf32>
    %62 = vector.broadcast %61 : vector<1x256xf32> to vector<16x256xf32>
    %63 = arith.mulf %60, %62 : vector<16x256xf32>
    %c241_i32_32 = arith.constant 241 : i32
    %64 = tpu.dynamic_rotate %43 by %c241_i32_32 dim 1 : vector<16x256xf32>, i32 -> vector<16x256xf32>
    %c6_33 = arith.constant 6 : index
    %c0_34 = arith.constant 0 : index
    %65 = vector.load %arg2[%c6_33, %c0_34] : memref<9x256xf32, #tpu.memory_space<vmem>>, vector<1x256xf32>
    %66 = vector.broadcast %65 : vector<1x256xf32> to vector<16x256xf32>
    %67 = arith.mulf %64, %66 : vector<16x256xf32>
    %c240_i32_35 = arith.constant 240 : i32
    %68 = tpu.dynamic_rotate %43 by %c240_i32_35 dim 1 : vector<16x256xf32>, i32 -> vector<16x256xf32>
    %c7_36 = arith.constant 7 : index
    %c0_37 = arith.constant 0 : index
    %69 = vector.load %arg2[%c7_36, %c0_37] : memref<9x256xf32, #tpu.memory_space<vmem>>, vector<1x256xf32>
    %70 = vector.broadcast %69 : vector<1x256xf32> to vector<16x256xf32>
    %71 = arith.mulf %68, %70 : vector<16x256xf32>
    %c239_i32_38 = arith.constant 239 : i32
    %72 = tpu.dynamic_rotate %43 by %c239_i32_38 dim 1 : vector<16x256xf32>, i32 -> vector<16x256xf32>
    %c8_39 = arith.constant 8 : index
    %c0_40 = arith.constant 0 : index
    %73 = vector.load %arg2[%c8_39, %c0_40] : memref<9x256xf32, #tpu.memory_space<vmem>>, vector<1x256xf32>
    %74 = vector.broadcast %73 : vector<1x256xf32> to vector<16x256xf32>
    %75 = arith.mulf %72, %74 : vector<16x256xf32>
    %76 = tpu.concatenate %47, %51, %55, %59, %43, %63, %67, %71, %75 in 0 : vector<16x256xf32>, vector<16x256xf32>, vector<16x256xf32>, vector<16x256xf32>, vector<16x256xf32>, vector<16x256xf32>, vector<16x256xf32>, vector<16x256xf32>, vector<16x256xf32> -> vector<144x256xf32>
    %c0_41 = arith.constant 0 : index
    %c0_42 = arith.constant 0 : index
    %77 = vector.load %arg5[%c0_41, %c0_42] : memref<16x144xf32, #tpu.memory_space<vmem>>, vector<16x144xf32>
    %cst_43 = arith.constant dense<0.000000e+00> : vector<16x256xf32>
    %78 = tpu.matmul %77, %76, %cst_43 {dimension_numbers = #tpu.dot_dimension_numbers<[1], [0], [0], [1], [0, 0, 1, 1], [], []>} : vector<16x144xf32>, vector<144x256xf32>, vector<16x256xf32> -> vector<16x256xf32>
    %c0_44 = arith.constant 0 : index
    %c0_45 = arith.constant 0 : index
    %79 = vector.load %arg6[%c0_44, %c0_45] : memref<16x256xf32, #tpu.memory_space<vmem>>, vector<16x256xf32>
    %cst_46 = arith.constant 0.000000e+00 : f32
    %80 = vector.broadcast %cst_46 : f32 to vector<16x256xf32>
    %81 = arith.cmpf ogt, %79, %80 : vector<16x256xf32>
    %cst_47 = arith.constant 0.000000e+00 : f32
    %82 = vector.broadcast %cst_47 : f32 to vector<16x256xf32>
    %83 = arith.cmpf olt, %78, %82 : vector<16x256xf32>
    %84 = arith.andi %81, %83 : vector<16x256xi1>
    %cst_48 = arith.constant 0.000000e+00 : f32
    %85 = vector.broadcast %cst_48 : f32 to vector<16x256xf32>
    %86 = arith.select %84, %85, %78 : vector<16x256xi1>, vector<16x256xf32>
    %cst_49 = arith.constant dense<0.000000e+00> : vector<16xf32>
    %87 = vector.multi_reduction <add>, %86, %cst_49 [1] : vector<16x256xf32> to vector<16xf32>
    %88 = vector.shape_cast %87 : vector<16xf32> to vector<16x1xf32>
    %cst_50 = arith.constant 3.906250e-03 : f32
    %89 = vector.broadcast %cst_50 : f32 to vector<16x1xf32>
    %90 = arith.mulf %88, %89 : vector<16x1xf32>
    %c0_51 = arith.constant 0 : index
    %c0_52 = arith.constant 0 : index
    %91 = vector.load %arg7[%c0_51, %c0_52] : memref<10x16xf32, #tpu.memory_space<vmem>>, vector<10x16xf32>
    %cst_53 = arith.constant dense<0.000000e+00> : vector<10x1xf32>
    %92 = tpu.matmul %91, %90, %cst_53 {dimension_numbers = #tpu.dot_dimension_numbers<[1], [0], [0], [1], [0, 0, 1, 1], [], []>} : vector<10x16xf32>, vector<16x1xf32>, vector<10x1xf32> -> vector<10x1xf32>
    %c0_54 = arith.constant 0 : index
    %c0_55 = arith.constant 0 : index
    %93 = vector.load %arg8[%c0_54, %c0_55] : memref<10x1xf32, #tpu.memory_space<vmem>>, vector<10x1xf32>
    %94 = arith.addf %92, %93 : vector<10x1xf32>
    %c0_56 = arith.constant 0 : index
    %c0_57 = arith.constant 0 : index
    %c0_58 = arith.constant 0 : index
    %95 = vector.load %arg9[%c0_56, %c0_57, %c0_58] : memref<1x10x1xf32, #tpu.memory_space<vmem>>, vector<1x10x1xf32>
    %96 = vector.shape_cast %95 : vector<1x10x1xf32> to vector<10x1xf32>
    %97 = vector.shape_cast %94 : vector<10x1xf32> to vector<1x10x1xf32>
    tpu.vector_store %arg9[%c0_56, %c0_57, %c0_58], %97 {strides = array<i32>} : memref<1x10x1xf32, #tpu.memory_space<vmem>>, vector<1x10x1xf32>,
    return
  }
  func.func @transform_0(%arg0: i32) -> (i32, i32) {
    %c0_i32 = arith.constant 0 : i32
    %c0_i32_0 = arith.constant 0 : i32
    return %c0_i32, %arg0 : i32, i32
  }
  func.func @transform_1(%arg0: i32) -> (i32, i32) {
    %c0_i32 = arith.constant 0 : i32
    %c0_i32_0 = arith.constant 0 : i32
    %c0_i32_1 = arith.constant 0 : i32
    return %c0_i32, %c0_i32_0 : i32, i32
  }
  func.func @transform_2(%arg0: i32) -> (i32, i32) {
    %c0_i32 = arith.constant 0 : i32
    %c0_i32_0 = arith.constant 0 : i32
    %c0_i32_1 = arith.constant 0 : i32
    return %c0_i32, %c0_i32_0 : i32, i32
  }
  func.func @transform_3(%arg0: i32) -> (i32, i32) {
    %c0_i32 = arith.constant 0 : i32
    %c0_i32_0 = arith.constant 0 : i32
    %c0_i32_1 = arith.constant 0 : i32
    return %c0_i32, %c0_i32_0 : i32, i32
  }
  func.func @transform_4(%arg0: i32) -> (i32, i32) {
    %c0_i32 = arith.constant 0 : i32
    %c0_i32_0 = arith.constant 0 : i32
    %c0_i32_1 = arith.constant 0 : i32
    return %c0_i32, %c0_i32_0 : i32, i32
  }
  func.func @transform_5(%arg0: i32) -> (i32, i32) {
    %c0_i32 = arith.constant 0 : i32
    %c0_i32_0 = arith.constant 0 : i32
    %c0_i32_1 = arith.constant 0 : i32
    return %c0_i32, %c0_i32_0 : i32, i32
  }
  func.func @transform_6(%arg0: i32) -> (i32, i32) {
    %c0_i32 = arith.constant 0 : i32
    %c0_i32_0 = arith.constant 0 : i32
    %c0_i32_1 = arith.constant 0 : i32
    return %c0_i32, %c0_i32_0 : i32, i32
  }
  func.func @transform_7(%arg0: i32) -> (i32, i32) {
    %c0_i32 = arith.constant 0 : i32
    %c0_i32_0 = arith.constant 0 : i32
    %c0_i32_1 = arith.constant 0 : i32
    return %c0_i32, %c0_i32_0 : i32, i32
  }
  func.func @transform_8(%arg0: i32) -> (i32, i32, i32) {
    %c0_i32 = arith.constant 0 : i32
    %c0_i32_0 = arith.constant 0 : i32
    %c0_i32_1 = arith.constant 0 : i32
    return %arg0, %c0_i32, %c0_i32_0 : i32, i32, i32
  }
}

</mosaic_0001>

<bundles_post_ra>
// kernel: _lambda_.1
= control target key start
LH: loop header
LB: loop body
LE: loop exit
PB: predicated region body
PF: predicated region fallthrough
CT: control target
= control target key end

     0   :  { %s1162_s27 = smov 0   ;;  %s1630_s0 = inlined_call_operand.vmem [shape: f32[8,512], index: 0, kind: input, shape index: {}]   ;;  %s1631_s1 = inlined_call_operand.vmem [shape: f32[9,256], index: 1, kind: input, shape index: {}]   ;;  %s1632_s2 = inlined_call_operand.vmem [shape: f32[16,72], index: 2, kind: input, shape index: {}]   ;;  %s1633_s3 = inlined_call_operand.vmem [shape: f32[16,256], index: 3, kind: input, shape index: {}]   ;;  %s1634_s4 = inlined_call_operand.vmem [shape: f32[16,144], index: 4, kind: input, shape index: {}]   ;;  %s1635_s5 = inlined_call_operand.vmem [shape: f32[16,256], index: 5, kind: input, shape index: {}]   ;;  %s1636_s6 = inlined_call_operand.vmem [shape: f32[10,16], index: 6, kind: input, shape index: {}]   ;;  %s1637_s7 = inlined_call_operand.vmem [shape: f32[10,1], index: 7, kind: input, shape index: {}]   ;;  %s1638_s8 = inlined_call_operand.vmem [shape: f32[2,10,1], index: 8, kind: output, shape index: {}]  }
   0x1 LB: > { %s1168_s28 = sadd.s32 4294967295, %s1106_s27   ;;  %p985_p0 = scmp.ge.s32.totalorder %s1106_s27, 1  ;;  %s1106_s27 = sphi %s1162_s27, %s18_s27  }
   0x2   : > { %p263_p1 = scmp.lt.s32.totalorder %s1106_s27, 3 }
   0x4   : > { %p264_p2 = pnand %p985_p0, %p263_p1 }
   0x5   : > { %s986_s29 = sshll.u32 (!%p264_p2), %s1168_s28, 1  ;;  %s1108_s12 = smov (!%p264_p2), 16   ;;  %v1114_v2 = vmov (!%p264_p2), 0.0   ;;  %v314_v3 = vlaneseq (!%p264_p2)  ;;  %v990_v8 = vld [vmem:[%s1631_s1 + $0x1] ss:$8 sm:$0x3] (!%p264_p2) }
   0x6   : > { %267 = sbr.rel (%p264_p2) target bundleno = 1158 (0x486), region = 52  ;;  %p298_p3 = scmp.lt.s32.totalorder (!%p264_p2), %s986_s29, 3  ;;  %560 = vmatprep.mubr.f32.mxu0 (!%p264_p2), %v1114_v2  ;;  %v319_v9 = vld [vmem:[%s1631_s1] ss:$8 sm:$0x3] (!%p264_p2)  ;;  %vm489_vm8 = vcmask (!%p264_p2), 588800  }
   0x7   : > { %s1109_s13 = smov (!%p264_p2), 17   ;;  %s1110_s14 = smov (!%p264_p2), 15   ;;  %v322_v4 = vshrl.u32 (!%p264_p2), %v314_v3, 7  ;;  %v1213_v5 = vand.u32 (!%p264_p2), 127, %v314_v3 }
   0x8   : > { %s1111_s15 = smov (!%p264_p2), 1   ;;  %s1112_s16 = smov (!%p264_p2), 127   ;;  %v991_v24 = vld [vmem:[%s1631_s1 + $0x2] ss:$8 sm:$0x3] (!%p264_p2) }
   0x9   : > { %s1113_s17 = smov (!%p264_p2), 113   ;;  %s1115_s18 = smov (!%p264_p2), 112   ;;  %v1215_v6 = vsub.s32 (!%p264_p2), 0, %v322_v4  ;;  %v1217_v7 = vsub.s32 (!%p264_p2), 1, %v322_v4  ;;  %vm337_vm0 = vcmp.lt.s32.totalorder (!%p264_p2), %v1213_v5, 16  ;;  %vm316_vm1 = vcmp.lt.s32.totalorder (!%p264_p2), %v1213_v5, 17 }
   0xa   : > { %s1116_s19 = smov (!%p264_p2), 111   ;;  %v992_v27 = vld [vmem:[%s1631_s1 + $0x3] ss:$8 sm:$0x3] (!%p264_p2)  ;;  %vm359_vm2 = vcmp.lt.s32.totalorder (!%p264_p2), %v1213_v5, 15  ;;  %vm381_vm3 = vcmp.lt.s32.totalorder (!%p264_p2), %v1213_v5, 1 }
   0xb   : > { %v1228_v12 = vrot.slane (!%p264_p2), %v990_v8, %v1215_v6  ;;  %v1231_v13 = vrot.slane (!%p264_p2), %v319_v9, %v1215_v6  ;;  %v1234_v14 = vrot.slane (!%p264_p2), %v319_v9, %v1217_v7  ;;  %v1237_v15 = vrot.slane (!%p264_p2), %v990_v8, %v1217_v7  ;;  %v993_v36 = vld [vmem:[%s1631_s1 + $0x5] ss:$8 sm:$0x3] (!%p264_p2)  ;;  %v994_v57 = vld [vmem:[%s1631_s1 + $0x6] ss:$8 sm:$0x3] (!%p264_p2) }
   0xc   : > { %v1259_v32 = vrot.slane (!%p264_p2), %v991_v24, %v1215_v6  ;;  %v1262_v33 = vrot.slane (!%p264_p2), %v991_v24, %v1217_v7  ;;  %v1266_v34 = vrot.slane (!%p264_p2), %v992_v27, %v1215_v6  ;;  %v1269_v35 = vrot.slane (!%p264_p2), %v992_v27, %v1217_v7  ;;  %v995_v58 = vld [vmem:[%s1631_s1 + $0x7] ss:$8 sm:$0x3] (!%p264_p2)  ;;  %p303_p4 = scmp.lt.s32.totalorder (!%p264_p2), %s1168_s28, 1 }
   0xd   : > { %s1665_s29 = smov (!%p298_p3, %s986_s29), 3  ;;  %vm403_vm4 = vcmp.lt.s32.totalorder %v1213_v5, 127  ;;  %v1284_v43 = vrot.slane %v993_v36, %v1215_v6  ;;  %v1287_v44 = vrot.slane %v993_v36, %v1217_v7  ;;  %vm1641_vm5 = vcmp.lt.s32.totalorder %v1213_v5, 113  ;;  %v573_v36 = vld [vmem:[%s1633_s3] sm:$0xff] }
   0xe   : > { %s987_s30 = sshll.u32 %s1665_s29, 3  ;;  %v1309_v63 = vrot.slane %v994_v57, %v1215_v6  ;;  %v1312_v3 = vrot.slane %v994_v57, %v1217_v7  ;;  %vm1640_vm6 = vcmp.lt.s32.totalorder %v1213_v5, 112  ;;  %v1316_v4 = vrot.slane %v995_v58, %v1215_v6  ;;  %s1667_s28 = smov (!%p303_p4, %s1168_s28), 1 }
   0xf   : > { %s301_s11 = scalar_lea.vmem %s1630_s0, %s987_s30  ;;  %v1319_v8 = vrot.slane %v995_v58, %v1217_v7  ;;  %vm1639_vm7 = vcmp.lt.s32.totalorder %v1213_v5, 111  ;;  %vm577_vm9 = vcmp.gt.f32.partialorder %v573_v36, 0.0 }
  0x10   : > { %v1176_v0 = vld [vmem:[%s301_s11] sm:$0xff]  ;;  %v1182_v1 = vld [vmem:[%s301_s11 + $0x8] sm:$0xff] }
  0x11   : > { %333 = vrot.lane.b32.xlu1 %v1176_v0, %s1108_s12  ;;  %310 = vrot.lane.b32.xlu0 %v1176_v0, %s1109_s13 }
  0x15   : > { %335 = vrot.lane.b32.xlu1 %v1182_v1, %s1108_s12  ;;  %312 = vrot.lane.b32.xlu0 %v1182_v1, %s1109_s13 }
  0x19   : > { %357 = vrot.lane.b32.xlu1 %v1182_v1, %s1110_s14  ;;  %355 = vrot.lane.b32.xlu0 %v1176_v0, %s1110_s14 }
  0x1d   : > { %379 = vrot.lane.b32.xlu1 %v1182_v1, %s1111_s15  ;;  %377 = vrot.lane.b32.xlu0 %v1176_v0, %s1111_s15 }
  0x21   : > { %401 = vrot.lane.b32.xlu1 %v1182_v1, %s1112_s16  ;;  %399 = vrot.lane.b32.xlu0 %v1176_v0, %s1112_s16 }
  0x25   : > { %423 = vrot.lane.b32.xlu1 %v1182_v1, %s1113_s17  ;;  %421 = vrot.lane.b32.xlu0 %v1176_v0, %s1113_s17 }
  0x29   : > { %445 = vrot.lane.b32.xlu1 %v1182_v1, %s1115_s18  ;;  %443 = vrot.lane.b32.xlu0 %v1176_v0, %s1115_s18 }
  0x2d   : > { %467 = vrot.lane.b32.xlu1 %v1182_v1, %s1116_s19  ;;  %465 = vrot.lane.b32.xlu0 %v1176_v0, %s1116_s19 }
  0x83   : > { %v334_v10 = vpop.permute.xlu1 %333  ;;  %v311_v11 = vpop.permute.xlu0 %310 }
  0x87   : > { %v336_v16 = vpop.permute.xlu1 %335  ;;  %v313_v17 = vpop.permute.xlu0 %312 }
  0x88   : > { %v338_v18 = vsel %vm337_vm0, %v334_v10, %v336_v16  ;;  %v339_v19 = vsel %vm337_vm0, %v336_v16, %v334_v10  ;;  %v317_v20 = vsel %vm316_vm1, %v311_v11, %v313_v17  ;;  %v318_v21 = vsel %vm316_vm1, %v313_v17, %v311_v11 }
  0x89   : > { %v353_v22 = vmul.f32 %v1228_v12, %v339_v19  ;;  %v331_v23 = vmul.f32 %v1231_v13, %v318_v21  ;;  %v332_v25 = vmul.f32 %v1234_v14, %v317_v20  ;;  %v354_v26 = vmul.f32 %v1237_v15, %v338_v18 }
  0x8b   : > { %v358_v28 = vpop.permute.xlu1 %357  ;;  %v356_v29 = vpop.permute.xlu0 %355  ;;  %v1025_v30 = vpack.c.bf16 %v354_v26, %v332_v25  ;;  %v1027_v31 = vpack.c.bf16 %v353_v22, %v331_v23 }
  0x8c   : > { %v360_v37 = vsel %vm359_vm2, %v356_v29, %v358_v28  ;;  %v361_v38 = vsel %vm359_vm2, %v358_v28, %v356_v29 }
  0x8d   : > { %1026 = vmatprep.subr.bf16.mxu0 %v1025_v30  ;;  %v375_v45 = vmul.f32 %v1259_v32, %v361_v38  ;;  %v376_v46 = vmul.f32 %v1262_v33, %v360_v37  ;;  %v574_v37 = vld [vmem:[%s1633_s3 + $0x8] sm:$0xff] }
  0x8e   : > { %1028 = vmatpush1.bf16.msra.mxu0 %v1027_v31  ;;  %v488_v31 = vld [vmem:[%s1632_s2 + $0x8] sm:$0xff]  ;;  %vm578_vm10 = vcmp.gt.f32.partialorder %v574_v37, 0.0 }
  0x8f   : > { %v380_v39 = vpop.permute.xlu1 %379  ;;  %v378_v40 = vpop.permute.xlu0 %377 }
  0x90   : > { %v382_v41 = vsel %vm381_vm3, %v378_v40, %v380_v39  ;;  %v383_v42 = vsel %vm381_vm3, %v380_v39, %v378_v40  ;;  %v576_v40 = vld [vmem:[%s1633_s3 + $0x18] sm:$0xff] }
  0x91   : > { %v397_v47 = vmul.f32 %v1266_v34, %v383_v42  ;;  %v398_v48 = vmul.f32 %v1269_v35, %v382_v41 }
  0x93   : > { %v402_v49 = vpop.permute.xlu1 %401  ;;  %v400_v50 = vpop.permute.xlu0 %399  ;;  %v1029_v51 = vpack.c.bf16 %v398_v48, %v376_v46  ;;  %v1031_v52 = vpack.c.bf16 %v397_v47, %v375_v45 }
  0x94   : > { %v404_v53 = vsel %vm403_vm4, %v400_v50, %v402_v49  ;;  %v405_v54 = vsel %vm403_vm4, %v402_v49, %v400_v50 }
  0x95   : > { %v419_v55 = vmul.f32 %v1284_v43, %v404_v53  ;;  %v420_v56 = vmul.f32 %v1287_v44, %v405_v54  ;;  %1030 = vmatprep.subr.bf16.mxu0 %v1029_v51 }
  0x96   : > { %1032 = vmatpush1.bf16.msra.mxu0 %v1031_v52 }
  0x97   : > { %v424_v59 = vpop.permute.xlu1 %423  ;;  %v422_v60 = vpop.permute.xlu0 %421  ;;  %v1033_v61 = vpack.c.bf16 %v420_v56, %v1182_v1  ;;  %v1035_v62 = vpack.c.bf16 %v419_v55, %v1176_v0  ;;  %v996_v1 = vld [vmem:[%s1631_s1 + $0x10] ss:$8 sm:$0x3]  ;;  %v722_v56 = vld [vmem:[%s1634_s4 + $0x8] sm:$0xff] }
  0x98   : > { %v426_v0 = vsel %vm1641_vm5, %v422_v60, %v424_v59  ;;  %v427_v9 = vsel %vm1641_vm5, %v424_v59, %v422_v60  ;;  %v1334_v18 = vrot.slane %v996_v1, %v1217_v7  ;;  %v1341_v23 = vrot.slane %v996_v1, %v1215_v6  ;;  %v487_v6 = vld [vmem:[%s1632_s2] sm:$0xff] }
  0x99   : > { %1034 = vmatprep.subr.bf16.mxu0 %v1033_v61  ;;  %v441_v19 = vmul.f32 %v1309_v63, %v426_v0  ;;  %v442_v20 = vmul.f32 %v1312_v3, %v427_v9 }
  0x9a   : > { %1036 = vmatpush1.bf16.msra.mxu0 %v1035_v62 }
  0x9b   : > { %v446_v10 = vpop.permute.xlu1 %445  ;;  %v444_v11 = vpop.permute.xlu0 %443 }
  0x9c   : > { %v448_v16 = vsel %vm1640_vm6, %v444_v11, %v446_v10  ;;  %v449_v17 = vsel %vm1640_vm6, %v446_v10, %v444_v11 }
  0x9d   : > { %v463_v21 = vmul.f32 %v1316_v4, %v448_v16  ;;  %v464_v22 = vmul.f32 %v1319_v8, %v449_v17 }
  0x9f   : > { %v468_v24 = vpop.permute.xlu1 %467  ;;  %v1037_v25 = vpack.c.bf16 %v464_v22, %v442_v20  ;;  %v466_v26 = vpop.permute.xlu0 %465  ;;  %v1039_v27 = vpack.c.bf16 %v463_v21, %v441_v19 }
  0xa0   : > { %v470_v28 = vsel %vm1639_vm7, %v466_v26, %v468_v24  ;;  %v471_v7 = vsel %vm1639_vm7, %v468_v24, %v466_v26 }
  0xa1   : > { %1038 = vmatprep.subr.bf16.mxu0 %v1037_v25  ;;  %v486_v29 = vmul.f32 %v1334_v18, %v471_v7  ;;  %v485_v30 = vmul.f32 %v1341_v23, %v470_v28 }
  0xa2   : > { %1040 = vmatpush1.bf16.msra.mxu0 %v1039_v27 }
  0xa3   : > { %512 = vmatprep.subr.mxu0 %v486_v29 }
  0xa6   : > { %513 = vmatpush1.msra.mxu0 %v485_v30 }
  0xa7   : > { %997 = vmatmul.mubr.msk.f32.vlgmr.msra.gmra.mrb[0].mxu0 %vm489_vm8, %v487_v6 }
  0xa8   : > { %566 = vmatprep.mubr.f32.mxu0 %v1114_v2  ;;  %v575_v2 = vld [vmem:[%s1633_s3 + $0x10] sm:$0xff] }
  0xa9   : > { %vm579_vm15 = vcmp.gt.f32.partialorder %v575_v2, 0.0 }
  0xab   : > { %998 = vmatmul.mubr.msk.f32.gmra.mrb[2].mxu0 %vm489_vm8, %v488_v31  ;;  %vm580_vm8 = vcmp.gt.f32.partialorder %v576_v40, 0.0 }
 0x17a   : > { %v1362_v38 = vpop.f32.mrb[0].mxu0 }
 0x17b   : > { %vm581_vm11 = vcmp.lt.f32.partialorder %v1362_v38, 0.0  ;;  %v1368_v39 = vpop.f32.mrb[1].mxu0 }
 0x17c   : > { %vm1373_vm12 = vmand %vm577_vm9, %vm581_vm11  ;;  %vm582_vm13 = vcmp.lt.f32.partialorder %v1368_v39, 0.0 }
 0x17d   : > { %v589_v42 = vsel %vm1373_vm12, 0.0, %v1362_v38  ;;  %vm1381_vm14 = vmand %vm578_vm10, %vm582_vm13 }
 0x17e   : > { %593 = vrot.lane.b32.xlu0 %v589_v42, %s1109_s13  ;;  %v1386_v46 = vpop.f32.mrb[2].mxu0  ;;  %vm999_vm9 = vmneg %vm1381_vm14  ;;  %v590_v54 = vsel %vm1381_vm14, 0.0, %v1368_v39 }
 0x17f   : > { %vm583_vm11 = vcmp.lt.f32.partialorder %v1386_v46, 0.0  ;;  %v1060_v47 = vpack.c.bf16 %v1386_v46, %v1362_v38  ;;  %v1393_v48 = vpop.f32.mrb[3].mxu0  ;;  %vm1001_vm10 = vmneg %vm1373_vm12 }
 0x180   : > { %vm587_vm13 = vmand %vm579_vm15, %vm583_vm11  ;;  %vm584_vm7 = vcmp.lt.f32.partialorder %v1393_v48, 0.0  ;;  %v1057_v49 = vpack.c.bf16 %v1393_v48, %v1368_v39 }
 0x181   : > { %v591_v50 = vsel %vm587_vm13, 0.0, %v1386_v46  ;;  %vm1401_vm6 = vmand %vm580_vm8, %vm584_vm7  ;;  %vm1660_vm8 = vcmp.lt.s32.totalorder %v1213_v5, 111 }
 0x182   : > { %609 = vrot.lane.b32.xlu0 %v589_v42, %s1108_s12  ;;  %595 = vrot.lane.b32.xlu1 %v591_v50, %s1109_s13  ;;  %vm1003_vm5 = vmneg %vm1401_vm6  ;;  %v592_v55 = vsel %vm1401_vm6, 0.0, %v1393_v48 }
 0x183   : > { %vm1409_vm12 = vmpackc.low %vm1003_vm5, %vm999_vm9  ;;  %vm725_vm5 = vcmask 130048  }
 0x184   : > { %vm1005_vm15 = vmneg %vm587_vm13  ;;  %1007 = vmatprep.mubr.msk.f32.mxu1 %vm725_vm5, %v722_v56 }
 0x185   : > { %vm1413_vm11 = vmpackc.low %vm1005_vm15, %vm1001_vm10 }
 0x186   : > { %625 = vrot.lane.b32.xlu0 %v589_v42, %s1110_s14  ;;  %611 = vrot.lane.b32.xlu1 %v591_v50, %s1108_s12  ;;  %vm1661_vm9 = vmmov %vm1660_vm8 }
 0x187   : > { %vm1662_vm10 = vmmov %vm1660_vm8 }
 0x188   : > { %vm1663_vm13 = vmmov %vm1660_vm8 }
 0x18a   : > { %641 = vrot.lane.b32.xlu0 %v589_v42, %s1111_s15  ;;  %627 = vrot.lane.b32.xlu1 %v591_v50, %s1110_s14 }
 0x18e   : > { %657 = vrot.lane.b32.xlu0 %v589_v42, %s1112_s16  ;;  %643 = vrot.lane.b32.xlu1 %v591_v50, %s1111_s15 }
 0x192   : > { %673 = vrot.lane.b32.xlu0 %v589_v42, %s1113_s17  ;;  %659 = vrot.lane.b32.xlu1 %v591_v50, %s1112_s16 }
 0x196   : > { %689 = vrot.lane.b32.xlu0 %v589_v42, %s1115_s18  ;;  %675 = vrot.lane.b32.xlu1 %v591_v50, %s1113_s17 }
 0x19a   : > { %597 = vrot.lane.b32.xlu0 %v590_v54, %s1109_s13  ;;  %691 = vrot.lane.b32.xlu1 %v591_v50, %s1115_s18 }
 0x19e   : > { %613 = vrot.lane.b32.xlu0 %v590_v54, %s1108_s12  ;;  %599 = vrot.lane.b32.xlu1 %v592_v55, %s1109_s13 }
 0x1a2   : > { %629 = vrot.lane.b32.xlu0 %v590_v54, %s1110_s14  ;;  %615 = vrot.lane.b32.xlu1 %v592_v55, %s1108_s12  ;;  %s1013_s12 = sshll.u32 %s1667_s28, 4 }
 0x1a6   : > { %645 = vrot.lane.b32.xlu0 %v590_v54, %s1111_s15  ;;  %631 = vrot.lane.b32.xlu1 %v592_v55, %s1110_s14 }
 0x1aa   : > { %705 = vrot.lane.b32.xlu0 %v589_v42, %s1116_s19  ;;  %647 = vrot.lane.b32.xlu1 %v592_v55, %s1111_s15 }
 0x1ae   : > { %661 = vrot.lane.b32.xlu0 %v590_v54, %s1112_s16  ;;  %707 = vrot.lane.b32.xlu1 %v591_v50, %s1116_s19 }
 0x1b2   : > { %677 = vrot.lane.b32.xlu0 %v590_v54, %s1113_s17  ;;  %663 = vrot.lane.b32.xlu1 %v592_v55, %s1112_s16 }
 0x1b6   : > { %693 = vrot.lane.b32.xlu0 %v590_v54, %s1115_s18  ;;  %679 = vrot.lane.b32.xlu1 %v592_v55, %s1113_s17 }
 0x1ba   : > { %709 = vrot.lane.b32.xlu0 %v590_v54, %s1116_s19  ;;  %695 = vrot.lane.b32.xlu1 %v592_v55, %s1115_s18 }
 0x1be   : > { %711 = vrot.lane.b32.xlu1 %v592_v55, %s1116_s19  ;;  %s307_s19 = scalar_lea.vmem %s1638_s8, %s1013_s12 }
 0x1f0   : > { %v594_v57 = vpop.permute.xlu0 %593 }
 0x1f4   : > { %v610_v58 = vpop.permute.xlu0 %609  ;;  %v596_v59 = vpop.permute.xlu1 %595 }
 0x1f8   : > { %v626_v60 = vpop.permute.xlu0 %625  ;;  %v612_v61 = vpop.permute.xlu1 %611 }
 0x1fc   : > { %v642_v62 = vpop.permute.xlu0 %641  ;;  %v628_v1 = vpop.permute.xlu1 %627 }
 0x200   : > { %v1456_v0 = vpop.permute.xlu0 %657  ;;  %v644_v9 = vpop.permute.xlu1 %643 }
 0x204   : > { %v1458_v10 = vpop.permute.xlu0 %673  ;;  %v1460_v11 = vpop.permute.xlu1 %659 }
 0x208   : > { %v1462_v16 = vpop.permute.xlu0 %689  ;;  %v1464_v17 = vpop.permute.xlu1 %675 }
 0x20c   : > { %v598_v19 = vpop.permute.xlu0 %597  ;;  %v1466_v20 = vpop.permute.xlu1 %691 }
 0x20d   : > { %v601_v21 = vsel %vm316_vm1, %v594_v57, %v598_v19  ;;  %v603_v22 = vsel %vm316_vm1, %v598_v19, %v594_v57 }
 0x20e   : > { %v605_v28 = vmul.f32 %v603_v22, %v1231_v13  ;;  %v606_v29 = vmul.f32 %v601_v21, %v1234_v14 }
 0x210   : > { %v614_v24 = vpop.permute.xlu0 %613  ;;  %v600_v25 = vpop.permute.xlu1 %599 }
 0x211   : > { %v602_v26 = vsel %vm316_vm1, %v596_v59, %v600_v25  ;;  %v604_v27 = vsel %vm316_vm1, %v600_v25, %v596_v59  ;;  %v617_v6 = vsel %vm337_vm0, %v610_v58, %v614_v24  ;;  %v619_v31 = vsel %vm337_vm0, %v614_v24, %v610_v58 }
 0x212   : > { %v607_v7 = vmul.f32 %v604_v27, %v1231_v13  ;;  %v608_v30 = vmul.f32 %v602_v26, %v1234_v14  ;;  %v621_v42 = vmul.f32 %v619_v31, %v1228_v12  ;;  %v622_v14 = vmul.f32 %v617_v6, %v1237_v15 }
 0x214   : > { %v630_v36 = vpop.permute.xlu0 %629  ;;  %v616_v37 = vpop.permute.xlu1 %615  ;;  %v1041_v2 = vpack.c.bf16 %v608_v30, %v606_v29  ;;  %v1043_v40 = vpack.c.bf16 %v607_v7, %v605_v28 }
 0x215   : > { %v618_v41 = vsel %vm337_vm0, %v612_v61, %v616_v37  ;;  %v620_v13 = vsel %vm337_vm0, %v616_v37, %v612_v61  ;;  %v633_v51 = vsel %vm359_vm2, %v626_v60, %v630_v36  ;;  %v635_v54 = vsel %vm359_vm2, %v630_v36, %v626_v60 }
 0x216   : > { %v623_v45 = vmul.f32 %v620_v13, %v1228_v12  ;;  %v624_v50 = vmul.f32 %v618_v41, %v1237_v15  ;;  %1042 = vmatprep.subr.bf16.mxu1 %v1041_v2  ;;  %v637_v15 = vmul.f32 %v635_v54, %v1259_v32  ;;  %v638_v61 = vmul.f32 %v633_v51, %v1262_v33 }
 0x217   : > { %1044 = vmatpush1.bf16.msra.mxu1 %v1043_v40  ;;  %vm1652_vm0 = vcmp.lt.s32.totalorder %v1213_v5, 113 }
 0x218   : > { %v646_v55 = vpop.permute.xlu0 %645  ;;  %v632_v56 = vpop.permute.xlu1 %631  ;;  %v1045_v57 = vpack.c.bf16 %v624_v50, %v622_v14  ;;  %v1047_v58 = vpack.c.bf16 %v623_v45, %v621_v42  ;;  %vm1653_vm1 = vmmov %vm1652_vm0 }
 0x219   : > { %v634_v59 = vsel %vm359_vm2, %v628_v1, %v632_v56  ;;  %v636_v12 = vsel %vm359_vm2, %v632_v56, %v628_v1  ;;  %v649_v60 = vsel %vm381_vm3, %v642_v62, %v646_v55  ;;  %v651_v22 = vsel %vm381_vm3, %v646_v55, %v642_v62  ;;  %vm1654_vm2 = vmmov %vm1652_vm0 }
 0x21a   : > { %v639_v19 = vmul.f32 %v636_v12, %v1259_v32  ;;  %v640_v21 = vmul.f32 %v634_v59, %v1262_v33  ;;  %1046 = vmatprep.subr.bf16.mxu1 %v1045_v57  ;;  %v653_v33 = vmul.f32 %v651_v22, %v1266_v34  ;;  %v654_v28 = vmul.f32 %v649_v60, %v1269_v35 }
 0x21b   : > { %1048 = vmatpush1.bf16.msra.mxu1 %v1047_v58 }
 0x21c   : > { %v706_v24 = vpop.permute.xlu0 %705  ;;  %v648_v25 = vpop.permute.xlu1 %647  ;;  %v1049_v26 = vpack.c.bf16 %v640_v21, %v638_v61  ;;  %v1051_v1 = vpack.c.bf16 %v639_v19, %v637_v15 }
 0x21d   : > { %v650_v27 = vsel %vm381_vm3, %v644_v9, %v648_v25  ;;  %v652_v32 = vsel %vm381_vm3, %v648_v25, %v644_v9  ;;  %vm1655_vm3 = vmmov %vm1652_vm0  ;;  %v810_v25 = vld [vmem:[%s1635_s5 + $0x8] sm:$0xff] }
 0x21e   : > { %v655_v7 = vmul.f32 %v652_v32, %v1266_v34  ;;  %v656_v29 = vmul.f32 %v650_v27, %v1269_v35  ;;  %1050 = vmatprep.subr.bf16.mxu1 %v1049_v26  ;;  %vm814_vm15 = vcmp.gt.f32.partialorder %v810_v25, 0.0  ;;  %v812_v32 = vld [vmem:[%s1635_s5 + $0x18] sm:$0xff] }
 0x21f   : > { %1052 = vmatpush1.bf16.msra.mxu1 %v1051_v1  ;;  %v811_v1 = vld [vmem:[%s1635_s5 + $0x10] sm:$0xff] }
 0x220   : > { %v662_v62 = vpop.permute.xlu0 %661  ;;  %v708_v30 = vpop.permute.xlu1 %707  ;;  %v1053_v6 = vpack.c.bf16 %v656_v29, %v654_v28  ;;  %v1055_v31 = vpack.c.bf16 %v655_v7, %v653_v33 }
 0x221   : > { %v665_v36 = vsel %vm403_vm4, %v1456_v0, %v662_v62  ;;  %v667_v9 = vsel %vm403_vm4, %v662_v62, %v1456_v0 }
 0x222   : > { %1054 = vmatprep.subr.bf16.mxu1 %v1053_v6  ;;  %v669_v40 = vmul.f32 %v665_v36, %v1284_v43  ;;  %v670_v0 = vmul.f32 %v667_v9, %v1287_v44  ;;  %v837_v36 = vld [vmem:[%s1636_s6] sm:$0xff] }
 0x223   : > { %1056 = vmatpush1.bf16.msra.mxu1 %v1055_v31  ;;  %1022 = vmatprep.mubr.msk.f32.mxu0 %vm725_vm5, %v837_v36 }
 0x224   : > { %v678_v37 = vpop.permute.xlu0 %677  ;;  %1059 = vmatprep.subr.msk.bf16.mxu1 %vm1409_vm12, %v1057_v49  ;;  %v664_v34 = vpop.permute.xlu1 %663 }
 0x225   : > { %v666_v35 = vsel %vm403_vm4, %v1460_v11, %v664_v34  ;;  %v668_v2 = vsel %vm403_vm4, %v664_v34, %v1460_v11  ;;  %v681_v48 = vsel %vm1652_vm0, %v1458_v10, %v678_v37  ;;  %v683_v49 = vsel %vm1653_vm1, %v678_v37, %v1458_v10 }
 0x226   : > { %v671_v41 = vmul.f32 %v666_v35, %v1284_v43  ;;  %v672_v39 = vmul.f32 %v668_v2, %v1287_v44  ;;  %v685_v10 = vmul.f32 %v681_v48, %v1309_v63  ;;  %v686_v14 = vmul.f32 %v683_v49, %v1312_v3 }
 0x227   : > { %1062 = vmatpush1.bf16.msk.msra.mxu1 %vm1413_vm11, %v1060_v47  ;;  %vm1656_vm4 = vcmp.lt.s32.totalorder %v1213_v5, 112  ;;  %v724_v5 = vld [vmem:[%s1634_s4 + $0x18] sm:$0xff] }
 0x228   : > { %v694_v52 = vpop.permute.xlu0 %693  ;;  %v680_v11 = vpop.permute.xlu1 %679  ;;  %v1063_v13 = vpack.c.bf16 %v672_v39, %v670_v0  ;;  %v1065_v43 = vpack.c.bf16 %v671_v41, %v669_v40  ;;  %vm1657_vm6 = vmmov %vm1656_vm4  ;;  %v838_v40 = vld [vmem:[%s1636_s6 + $0x8] sm:$0x3]  ;;  %v839_v41 = vld [vmem:[%s1637_s7] sm:$0xff] }
 0x229   : > { %v682_v44 = vsel %vm1654_vm2, %v1464_v17, %v680_v11  ;;  %v684_v42 = vsel %vm1655_vm3, %v680_v11, %v1464_v17  ;;  %v697_v47 = vsel %vm1656_vm4, %v1462_v16, %v694_v52  ;;  %v699_v53 = vsel %vm1657_vm6, %v694_v52, %v1462_v16  ;;  %vm1658_vm7 = vmmov %vm1656_vm4  ;;  %v840_v0 = vld [vmem:[%s1637_s7 + $0x8] sm:$0x3] }
 0x22a   : > { %v687_v38 = vmul.f32 %v682_v44, %v1309_v63  ;;  %v688_v46 = vmul.f32 %v684_v42, %v1312_v3  ;;  %1064 = vmatprep.subr.bf16.mxu1 %v1063_v13  ;;  %vm1659_vm14 = vmmov %vm1656_vm4  ;;  %v701_v54 = vmul.f32 %v697_v47, %v1316_v4  ;;  %v702_v55 = vmul.f32 %v699_v53, %v1319_v8 }
 0x22b   : > { %1066 = vmatpush1.bf16.msra.mxu1 %v1065_v43  ;;  %vm815_vm3 = vcmp.gt.f32.partialorder %v811_v1, 0.0  ;;  %vm816_vm4 = vcmp.gt.f32.partialorder %v812_v32, 0.0 }
 0x22c   : > { %v710_v45 = vpop.permute.xlu0 %709  ;;  %v696_v17 = vpop.permute.xlu1 %695  ;;  %v1067_v50 = vpack.c.bf16 %v688_v46, %v686_v14  ;;  %v1069_v51 = vpack.c.bf16 %v687_v38, %v685_v10 }
 0x22d   : > { %v698_v63 = vsel %vm1658_vm7, %v1466_v20, %v696_v17  ;;  %v700_v3 = vsel %vm1659_vm14, %v696_v17, %v1466_v20  ;;  %v713_v57 = vsel %vm1660_vm8, %v706_v24, %v710_v45  ;;  %v715_v58 = vsel %vm1661_vm9, %v710_v45, %v706_v24  ;;  %v721_v24 = vld [vmem:[%s1634_s4] sm:$0xff] }
 0x22e   : > { %v703_v56 = vmul.f32 %v698_v63, %v1316_v4  ;;  %v704_v16 = vmul.f32 %v700_v3, %v1319_v8  ;;  %1068 = vmatprep.subr.bf16.mxu1 %v1067_v50  ;;  %v717_v4 = vmul.f32 %v713_v57, %v1341_v23  ;;  %v718_v8 = vmul.f32 %v715_v58, %v1334_v18 }
 0x22f   : > { %1070 = vmatpush1.bf16.msra.mxu1 %v1069_v51  ;;  %vm924_vm9 = vcmask 1024  }
 0x230   : > { %v712_v59 = vpop.permute.xlu1 %711  ;;  %v1071_v12 = vpack.c.bf16 %v704_v16, %v702_v55  ;;  %v1073_v15 = vpack.c.bf16 %v703_v56, %v701_v54 }
 0x231   : > { %v714_v20 = vsel %vm1662_vm10, %v708_v30, %v712_v59  ;;  %v716_v61 = vsel %vm1663_vm13, %v712_v59, %v708_v30 }
 0x232   : > { %v719_v19 = vmul.f32 %v714_v20, %v1341_v23  ;;  %v720_v21 = vmul.f32 %v716_v61, %v1334_v18  ;;  %1072 = vmatprep.subr.bf16.mxu1 %v1071_v12  ;;  %v723_v18 = vld [vmem:[%s1634_s4 + $0x10] sm:$0xff]  ;;  %v809_v23 = vld [vmem:[%s1635_s5] sm:$0xff] }
 0x233   : > { %1074 = vmatpush1.bf16.msra.mxu1 %v1073_v15  ;;  %vm813_vm12 = vcmp.gt.f32.partialorder %v809_v23, 0.0 }
 0x234   : > { %v1075_v60 = vpack.c.bf16 %v720_v21, %v718_v8  ;;  %v1077_v22 = vpack.c.bf16 %v719_v19, %v717_v4 }
 0x236   : > { %1076 = vmatprep.subr.bf16.mxu1 %v1075_v60 }
 0x237   : > { %1078 = vmatpush1.bf16.msra.mxu1 %v1077_v22 }
 0x23a   : > { %797 = vmatmul.mubr.f32.vlgmr.msra.gmra.mrb[0].mxu1 %v721_v24 }
 0x23b   : > { %1008 = vmatprep.mubr.msk.f32.mxu1 %vm725_vm5, %v724_v5 }
 0x23e   : > { %803 = vmatmul.mubr.f32.gmra.mrb[2].mxu1 %v723_v18 }
 0x30d   : > { %v798_v26 = vpop.f32.mrb[0].mxu1 }
 0x30e   : > { %vm817_vm11 = vcmp.lt.f32.partialorder %v798_v26, 0.0  ;;  %v800_v27 = vpop.f32.mrb[1].mxu1 }
 0x30f   : > { %vm821_vm0 = vmand %vm813_vm12, %vm817_vm11  ;;  %vm818_vm1 = vcmp.lt.f32.partialorder %v800_v27, 0.0 }
 0x310   : > { %v825_v33 = vsel %vm821_vm0, 0.0, %v798_v26  ;;  %vm822_vm2 = vmand %vm814_vm15, %vm818_vm1 }
 0x311   : > { %v826_v28 = vsel %vm822_vm2, 0.0, %v800_v27  ;;  %v804_v7 = vpop.f32.mrb[2].mxu1 }
 0x312   : > { %vm819_vm6 = vcmp.lt.f32.partialorder %v804_v7, 0.0  ;;  %v806_v29 = vpop.f32.mrb[3].mxu1  ;;  %v829_v62 = vadd.f32 %v826_v28, %v825_v33 }
 0x313   : > { %vm823_vm7 = vmand %vm815_vm3, %vm819_vm6  ;;  %vm820_vm14 = vcmp.lt.f32.partialorder %v806_v29, 0.0 }
 0x314   : > { %v827_v30 = vsel %vm823_vm7, 0.0, %v804_v7  ;;  %vm824_vm8 = vmand %vm816_vm4, %vm820_vm14  ;;  %830 = vadd.xlane.f32.xlu0 %v829_v62 }
 0x315   : > { %v828_v6 = vsel %vm824_vm8, 0.0, %v806_v29 }
 0x316   : > { %v832_v31 = vadd.f32 %v828_v6, %v827_v30 }
 0x318   : > { %833 = vadd.xlane.f32.xlu1 %v832_v31 }
 0x3a1   : > { %v831_v9 = vpop.xlane.xlu0 %830 }
 0x3a2   : > { %v835_v34 = vmul.f32 0.00390625, %v831_v9 }
 0x3a5   : > { %v834_v37 = vpop.xlane.xlu1 %833 }
 0x3a6   : > { %v836_v35 = vmul.f32 0.00390625, %v834_v37 }
 0x3a8   : > { %v1079_v2 = vpack.c.bf16 %v836_v35, %v835_v34 }
 0x3aa   : > { %1080 = vmatprep.subr.bf16.mxu0 %v1079_v2 }
 0x3ab   : > { %1082 = vmatpush3.bf16.msra.mxu0 %v1079_v2 }
 0x3ae   : > { %1023 = vmatmul.mubr.msk.f32.vlgmr.msra.gmra.mrb[4].mxu0 %vm725_vm5, %v838_v40  ;;  %vm922_vm5 = vcmask 7168  }
 0x481   : > { %v1024_v39 = vpop.f32.mrb[4].mxu0 }
 0x482   : > { %v919_v48 = vadd.f32 %v1024_v39, %v840_v0  ;;  %v913_v49 = vpop.f32.mrb[5].mxu0 }
 0x483   : > { %v914_v52 = vadd.f32 %v913_v49, %v839_v41 }
 0x484   : > { %925 = vst.msk [vmem:[%s307_s19 + $0x8] sm:$0x3] %vm924_vm9, %v919_v48 }
 0x485   : > { %923 = vst.msk [vmem:[%s307_s19] sm:$0xff] %vm922_vm5, %v914_v52 }
 0x486 PF: > { %s18_s27 = sadd.s32 1, %s1106_s27  }
 0x487   : > { %p15_p5 = scmp.ge.s32.totalorder %s18_s27, 4  }
 0x489   :  { %17 = sbr.rel (!%p15_p5) target bundleno = 1 (0x1), region = 89 }

</bundles_post_ra>
